<compile_context>
chip_gen: v5e
topology: v5e:2x2
jax: 0.10.0
libtpu: 0.0.40
codegen_flags: <defaults>
</compile_context>

<pallas_src>
import jax
import jax.numpy as jnp
from jax.experimental import pallas as pl
from jax.experimental.pallas import tpu as pltpu


def _embed_kernel(labels_ref, table_ref, out_ref):
    # labels_ref: (block_rows, 1) int32 VMEM  — already token-dropped indices.
    # table_ref:  (rows_pad, H)   VMEM        — full embedding table, resident.
    # out_ref:    (block_rows, H)             — dense output tile.
    block_rows = out_ref.shape[0]
    rows_pad = table_ref.shape[0]
    # One-hot gather on the MXU (VPU builds the 0/1 matrix, MXU does the gather).
    col = jax.lax.broadcasted_iota(jnp.int32, (block_rows, rows_pad), 1)
    onehot = (col == labels_ref[...]).astype(table_ref.dtype)
    out_ref[...] = jnp.dot(
        onehot, table_ref[...], preferred_element_type=jnp.float32
    ).astype(out_ref.dtype)


def label_embedder_forward(labels, emb_table, *, num_classes, dropout_prob,
                           train, force_drop_ids=None, rng=None,
                           block_rows=128):
    """JAX/Pallas equivalent of LabelEmbedder.forward.

    Returns (embeddings (N, H), drop_mask (N,) int32).
    """
    N = labels.shape[0]
    num_rows, H = emb_table.shape
    labels = labels.astype(jnp.int32)

    use_dropout = dropout_prob > 0
    if force_drop_ids is not None and not use_dropout:
        # Matches PyTorch: without dropout there is no CFG null-class row, so a
        # forced drop would index out of range. Fail loudly instead.
        raise ValueError("force_drop_ids requires dropout_prob > 0 "
                         "(no CFG null-class row in the embedding table).")

    if (train and use_dropout) or (force_drop_ids is not None):
        if force_drop_ids is None:
            # torch.rand(N) < dropout_prob  (deterministic here via JAX PRNG)
            drop = (jax.random.uniform(rng, (N,)) < dropout_prob).astype(jnp.int32)
        else:
            drop = (force_drop_ids == 1).astype(jnp.int32)
    else:
        drop = jnp.zeros((N,), jnp.int32)

    # token_drop hoisted out of the kernel.
    dropped_labels = jnp.where(drop != 0, num_classes, labels).astype(jnp.int32)

    # Sublane-dense row blocks: multiple of 8, capped at the padded batch size.
    block_rows = max(8, (block_rows // 8) * 8)
    block_rows = min(block_rows, pl.cdiv(N, 8) * 8)
    n_pad = pl.cdiv(N, block_rows) * block_rows
    if n_pad != N:
        dropped_labels = jnp.pad(dropped_labels, (0, n_pad - N))  # pad -> row 0
    labels_2d = dropped_labels.reshape(n_pad, 1)

    # Pad table rows to a multiple of 128 so the one-hot (contraction) axis is
    # lane-dense for the MXU; padded rows contribute exact zeros.
    rows_pad = pl.cdiv(num_rows, 128) * 128
    table = emb_table
    if rows_pad != num_rows:
        table = jnp.pad(emb_table, ((0, rows_pad - num_rows), (0, 0)))

    grid = (n_pad // block_rows,)
    grid_spec = pltpu.PrefetchScalarGridSpec(
        num_scalar_prefetch=0,
        grid=grid,
        in_specs=[
            # Per-block label column (sublane-oriented).
            pl.BlockSpec((block_rows, 1), lambda i: (i, 0)),
            # Full table, constant block index -> loaded into VMEM once and
            # kept resident across all grid steps.
            pl.BlockSpec((rows_pad, H), lambda i: (0, 0)),
        ],
        out_specs=pl.BlockSpec((block_rows, H), lambda i: (i, 0)),
    )

    out = pl.pallas_call(
        _embed_kernel,
        out_shape=jax.ShapeDtypeStruct((n_pad, H), emb_table.dtype),
        grid_spec=grid_spec,
        compiler_params=pltpu.CompilerParams(
            dimension_semantics=("parallel",)),
    )(labels_2d, table)
    return out[:N], drop


if __name__ == "__main__":
    num_classes = 10
    hidden_size = 128          # lane-dense (multiple of 128); still small
    dropout_prob = 0.1
    N = 8

    key = jax.random.PRNGKey(0)
    k_table, k_labels, k_drop = jax.random.split(key, 3)

    # nn.Embedding(num_classes + 1, hidden_size) weights ~ N(0, 1), deterministic.
    use_cfg_embedding = int(dropout_prob > 0)
    emb_table = jax.random.normal(
        k_table, (num_classes + use_cfg_embedding, hidden_size), jnp.float32)

    labels = jax.random.randint(k_labels, (N,), 0, num_classes, jnp.int32)

    # Training path (random token_drop).
    out, drop = label_embedder_forward(
        labels, emb_table,
        num_classes=num_classes, dropout_prob=dropout_prob,
        train=True, force_drop_ids=None, rng=k_drop)
    out = jax.block_until_ready(out)

    dropped_labels = jnp.where(drop != 0, num_classes, labels)
    ref = jnp.take(emb_table, dropped_labels, axis=0)
    assert out.shape == (N, hidden_size)
    assert jnp.allclose(out, ref, atol=0, rtol=0), "mismatch vs reference gather"

    # Inference path with forced CFG drops.
    force = jnp.array([1, 0, 1, 0, 0, 0, 0, 1], jnp.int32)
    out2, drop2 = label_embedder_forward(
        labels, emb_table,
        num_classes=num_classes, dropout_prob=dropout_prob,
        train=False, force_drop_ids=force, rng=None)
    out2 = jax.block_until_ready(out2)
    ref2 = jnp.take(emb_table, jnp.where(force == 1, num_classes, labels), axis=0)
    assert jnp.allclose(out2, ref2, atol=0, rtol=0)

    # No-dropout eval path (labels used as-is).
    out3, drop3 = label_embedder_forward(
        labels, emb_table,
        num_classes=num_classes, dropout_prob=dropout_prob,
        train=False, force_drop_ids=None, rng=None)
    out3 = jax.block_until_ready(out3)
    ref3 = jnp.take(emb_table, labels, axis=0)
    assert jnp.allclose(out3, ref3, atol=0, rtol=0)

    print("KERNEL_OK")
</pallas_src>

<mosaic_0001>
module attributes {stable_mosaic.version = 11 : i64} {
  func.func @_embed_kernel(%arg0: i32, %arg1: memref<8x1xi32, #tpu.memory_space<vmem>>, %arg2: memref<128x128xf32, #tpu.memory_space<vmem>>, %arg3: memref<8x128xf32, #tpu.memory_space<vmem>>) attributes {dimension_semantics = [#tpu.dimension_semantics<parallel>], iteration_bounds = array<i64: 1>, scalar_prefetch = 0 : i64, scratch_operands = 0 : i64, tpu.core_type = #tpu.core_type<tc>, window_params = [{transform_indices = @transform_0, window_bounds = array<i64: 8, 1>}, {pipeline_mode = #tpu.pipeline_mode<synchronous>, transform_indices = @transform_1, window_bounds = array<i64: 128, 128>}, {transform_indices = @transform_2, window_bounds = array<i64: 8, 128>}]} {
    %0 = tpu.iota {dimensions = array<i32: 1>} : vector<8x128xi32>
    %c0 = arith.constant 0 : index
    %c0_0 = arith.constant 0 : index
    %1 = vector.load %arg1[%c0, %c0_0] : memref<8x1xi32, #tpu.memory_space<vmem>>, vector<8x1xi32>
    %2 = vector.broadcast %1 : vector<8x1xi32> to vector<8x128xi32>
    %3 = arith.cmpi eq, %0, %2 : vector<8x128xi32>
    %4 = arith.extui %3 : vector<8x128xi1> to vector<8x128xi32>
    %5 = arith.sitofp %4 : vector<8x128xi32> to vector<8x128xf32>
    %c0_1 = arith.constant 0 : index
    %c0_2 = arith.constant 0 : index
    %6 = vector.load %arg2[%c0_1, %c0_2] : memref<128x128xf32, #tpu.memory_space<vmem>>, vector<128x128xf32>
    %cst = arith.constant dense<0.000000e+00> : vector<8x128xf32>
    %7 = tpu.matmul %5, %6, %cst {dimension_numbers = #tpu.dot_dimension_numbers<[1], [0], [0], [1], [0, 0, 1, 1], [], []>} : vector<8x128xf32>, vector<128x128xf32>, vector<8x128xf32> -> vector<8x128xf32>
    %c0_3 = arith.constant 0 : index
    %c0_4 = arith.constant 0 : index
    %8 = vector.load %arg3[%c0_3, %c0_4] : memref<8x128xf32, #tpu.memory_space<vmem>>, vector<8x128xf32>
    tpu.vector_store %arg3[%c0_3, %c0_4], %7 {strides = array<i32>} : memref<8x128xf32, #tpu.memory_space<vmem>>, vector<8x128xf32>,
    return
  }
  func.func @transform_0(%arg0: i32) -> (i32, i32) {
    %c0_i32 = arith.constant 0 : i32
    %c0_i32_0 = arith.constant 0 : i32
    return %arg0, %c0_i32 : i32, i32
  }
  func.func @transform_1(%arg0: i32) -> (i32, i32) {
    %c0_i32 = arith.constant 0 : i32
    %c0_i32_0 = arith.constant 0 : i32
    %c0_i32_1 = arith.constant 0 : i32
    return %c0_i32, %c0_i32_0 : i32, i32
  }
  func.func @transform_2(%arg0: i32) -> (i32, i32) {
    %c0_i32 = arith.constant 0 : i32
    %c0_i32_0 = arith.constant 0 : i32
    return %arg0, %c0_i32 : i32, i32
  }
}

</mosaic_0001>

<bundles_post_ra>
// kernel: tpu_custom_call.1
= control target key start
LH: loop header
LB: loop body
LE: loop exit
PB: predicated region body
PF: predicated region fallthrough
CT: control target
= control target key end

     0   :  { %7 = vsyncpa [#allocation3], 0  ;;  %s182_s0 = inlined_call_operand.vmem [shape: s32[8,1], index: 0, kind: input, shape index: {}]   ;;  %s183_s1 = inlined_call_operand.hbm [shape: f32[128,128], index: 1, kind: input, shape index: {}]   ;;  %s184_s2 = inlined_call_operand.hbm [shape: f32[8,128], index: 2, kind: output, shape index: {}]  }
   0x1   :  { %8 = vsyncpa [#allocation4], 0  ;;  %s15_s11 = sshll.u32 %s183_s1, 4  ;;  %s152_s12 = smov [#allocation2]   ;;  %s16_s11 = int_to_ptr.hbm [resolvable:$true] %s15_s11 }
   0x2   :  { %s17_s13 = sshll.u32 %s152_s12, 4  ;;  %s153_s14 = smov 128   ;;  %s18_s13 = int_to_ptr.vmem [resolvable:$true] %s17_s13 }
   0x3   :  { %s154_s15 = smov 8  }
   0x4   :  { %23 = dma.hbm_to_vmem [thread:$0]  %s16_s11, 2048, %s18_s13, [#allocation3], %s153_s14, %s153_s14, %s154_s15  }
   0x5   :  { %148 = dma.done.wait [#allocation3], 2048  }
   0x6   :  { %149 = vsyncadd [#allocation3], 4294965248  ;;  %v155_v0 = vmov 0   ;;  %v30_v1 = vld [vmem:[%s182_s0] sm:$0xff]  ;;  %v52_v2 = vld [vmem:[#allocation2 + $0x78] sm:$0xff]  ;;  %v28_v18 = vlaneseq  ;;  %v156_v21 = vmov 1.0  }
   0x7   :  { %99 = vset.pattern.permute.xlu0 %v155_v0  ;;  %v51_v3 = vld [vmem:[#allocation2 + $0x70] sm:$0xff]  ;;  %53 = vmatpush.msra.mxu0 %v52_v2  ;;  %v50_v4 = vld [vmem:[#allocation2 + $0x68] sm:$0xff]  ;;  %v49_v5 = vld [vmem:[#allocation2 + $0x60] sm:$0xff]  ;;  %s157_s0 = smov [#allocation5]   ;;  %s81_s20 = sshll.u32 %s184_s2, 4  ;;  %s82_s20 = int_to_ptr.hbm [resolvable:$true] %s81_s20 }
   0x8   :  { %32 = vperm.xlu0 %99, %v30_v1   ;;  %v48_v6 = vld [vmem:[#allocation2 + $0x58] sm:$0xff]  ;;  %v47_v7 = vld [vmem:[#allocation2 + $0x50] sm:$0xff]  ;;  %v46_v8 = vld [vmem:[#allocation2 + $0x48] sm:$0xff]  ;;  %v29_v19 = vand.u32 127, %v28_v18  ;;  %s79_s1 = sshll.u32 %s157_s0, 4  ;;  %s80_s1 = int_to_ptr.vmem [resolvable:$true] %s79_s1 }
   0x9   :  { %54 = vmatpush.msra.mxu0 %v51_v3  ;;  %v45_v9 = vld [vmem:[#allocation2 + $0x40] sm:$0xff]  ;;  %v44_v10 = vld [vmem:[#allocation2 + $0x38] sm:$0xff]  ;;  %v43_v11 = vld [vmem:[#allocation2 + $0x30] sm:$0xff] }
   0xa   :  { %v42_v12 = vld [vmem:[#allocation2 + $0x28] sm:$0xff]  ;;  %v41_v13 = vld [vmem:[#allocation2 + $0x20] sm:$0xff]  ;;  %v40_v14 = vld [vmem:[#allocation2 + $0x18] sm:$0xff] }
   0xb   :  { %55 = vmatpush.msra.mxu0 %v50_v4  ;;  %v39_v15 = vld [vmem:[#allocation2 + $0x10] sm:$0xff]  ;;  %v38_v16 = vld [vmem:[#allocation2 + $0x8] sm:$0xff]  ;;  %v37_v17 = vld [vmem:[#allocation2] sm:$0xff] }
   0xd   :  { %56 = vmatpush.msra.mxu0 %v49_v5 }
   0xf   :  { %57 = vmatpush.msra.mxu0 %v48_v6 }
  0x11   :  { %58 = vmatpush.msra.mxu0 %v47_v7 }
  0x13   :  { %59 = vmatpush.msra.mxu0 %v46_v8 }
  0x15   :  { %60 = vmatpush.msra.mxu0 %v45_v9 }
  0x17   :  { %61 = vmatpush.msra.mxu0 %v44_v10 }
  0x19   :  { %62 = vmatpush.msra.mxu0 %v43_v11 }
  0x1b   :  { %63 = vmatpush.msra.mxu0 %v42_v12 }
  0x1d   :  { %64 = vmatpush.msra.mxu0 %v41_v13 }
  0x1f   :  { %65 = vmatpush.msra.mxu0 %v40_v14 }
  0x21   :  { %66 = vmatpush.msra.mxu0 %v39_v15 }
  0x23   :  { %67 = vmatpush.msra.mxu0 %v38_v16 }
  0x25   :  { %68 = vmatpush.msra.mxu0 %v37_v17 }
  0x7a   :  { %v33_v20 = vpop.permute.xlu0 %32 }
  0x7b   :  { %vm34_vm0 = vcmp.eq.s32.totalorder %v29_v19, %v33_v20 }
  0x7c   :  { %92 = vmatmul.msk.f32.vlgmr.msra.gmra.mxu0 %vm34_vm0, %v156_v21 }
  0xf9   :  { %v70_v22 = vpop.f32.mrf.mxu0 }
  0xfa   :  { %73 = vst [vmem:[#allocation5] sm:$0xff] %v70_v22 }
  0xfb   :  { %84 = dma.vmem_to_hbm [thread:$0]  %s80_s1, 128, %s82_s20, [#allocation4]  }
  0xfc   :  { %150 = dma.done.wait [#allocation4], 128  }
  0xfd   :  { %151 = vsyncadd [#allocation4], 4294967168 }
  0xfe   :  { %89 = vsyncpa [#allocation3], 1 }
  0xff   :  { %90 = vsyncpa [#allocation4], 1 }

</bundles_post_ra>
